<compile_context>
chip_gen: v6e
topology: v6e:2x2x1
jax: 0.10.0
libtpu: 0.0.40
codegen_flags: <defaults>
</compile_context>

<pallas_src>
from functools import partial

import numpy as np
import jax
import jax.numpy as jnp
from jax.experimental import pallas as pl
from jax.experimental.pallas import tpu as pltpu


def bottleneck_kernel(x_ref, m_ref, w1_ref, b1_ref, w2_ref, b2_ref,
                      w3_ref, b3_ref, o_ref, *, W, C, L):
    x = x_ref[...]                                    # (C, L) f32, lane-dense

    # ---- conv1 (1x1) + bn1 (scale pre-folded into w1) + relu ---------------
    y1 = jnp.dot(w1_ref[...], x.astype(jnp.bfloat16),
                 preferred_element_type=jnp.float32)
    y1 = jnp.maximum(y1 + b1_ref[...], 0.0)           # (C, L) f32

    # ---- conv2 (3x3, stride=1, pad=1) + bn2 + relu --------------------------
    # Build the 9 flat-shifted taps of y1 and contract in ONE K = 9*C matmul.
    # All boundary handling (image edge + batch boundary, since batch is
    # folded into the lane axis) lives in the precomputed constant mask m_ref:
    # a single bf16 multiply, zero VPU mask math in-kernel.
    def shifted(y, s):
        # out[:, i] = y[:, i + s] inside [0, L), zero-filled outside (static).
        if s == 0:
            return y
        if s > 0:
            return jnp.concatenate(
                [y[:, s:], jnp.zeros((C, s), y.dtype)], axis=1)
        return jnp.concatenate(
            [jnp.zeros((C, -s), y.dtype), y[:, :L + s]], axis=1)

    taps = [shifted(y1, (kh - 1) * W + (kw - 1))
            for kh in range(3) for kw in range(3)]
    patches = jnp.concatenate(taps, axis=0).astype(jnp.bfloat16)   # (9C, L)
    patches = patches * m_ref[...]                     # one masked multiply

    y2 = jnp.dot(w2_ref[...], patches, preferred_element_type=jnp.float32)
    y2 = jnp.maximum(y2 + b2_ref[...], 0.0)            # (C, L) f32

    # ---- conv3 (1x1) + bn3 ---------------------------------------------------
    y3 = jnp.dot(w3_ref[...], y2.astype(jnp.bfloat16),
                 preferred_element_type=jnp.float32)
    y3 = y3 + b3_ref[...]

    # ---- residual add (identity path) + relu --------------------------------
    # Output stays f32 to match the PyTorch module's activation dtype.
    o_ref[...] = jnp.maximum(y3 + x, 0.0).astype(o_ref.dtype)


def _tap_mask(N, H, W, C):
    """Trace-time constant: (9*C, N*H*W) 0/1 validity mask, bf16.

    Row (kh*3+kw)*C + c, lane n*HW + h*W + w is 1 iff the 3x3 tap (kh, kw)
    reads an in-image pixel (handles image edges and the batch seams created
    by folding the batch into the lane axis).
    """
    HW = H * W
    L = N * HW
    lane = np.arange(L)
    h = (lane % HW) // W
    w = lane % W
    masks = []
    for kh in range(3):
        for kw in range(3):
            hh = h + kh - 1
            ww = w + kw - 1
            valid = (hh >= 0) & (hh < H) & (ww >= 0) & (ww < W)
            masks.append(np.broadcast_to(valid, (C, L)))
    m = np.concatenate(masks, axis=0).astype(np.float32)     # (9C, L)
    return jnp.asarray(m).astype(jnp.bfloat16)


def bottleneck_forward(x_nchw, kernel_params):
    w1, b1, w2, b2, w3, b3 = kernel_params
    N, C, H, W = x_nchw.shape
    L = N * H * W
    Cout = w3.shape[0]

    # (N,C,H,W) -> (C, N*H*W): channels on sublanes, batch*spatial on lanes.
    x_flat = jnp.transpose(x_nchw, (1, 0, 2, 3)).reshape(C, L)
    mask = _tap_mask(N, H, W, C)

    def full(shape):
        zeros = (0,) * len(shape)
        return pl.BlockSpec(shape, lambda i: zeros)

    out = pl.pallas_call(
        partial(bottleneck_kernel, W=W, C=C, L=L),
        out_shape=jax.ShapeDtypeStruct((Cout, L), jnp.float32),
        grid=(1,),
        in_specs=[
            full(x_flat.shape), full(mask.shape),
            full(w1.shape), full(b1.shape),
            full(w2.shape), full(b2.shape),
            full(w3.shape), full(b3.shape),
        ],
        out_specs=full((Cout, L)),
        compiler_params=pltpu.CompilerParams(
            dimension_semantics=("arbitrary",)),
    )(x_flat, mask, w1, b1, w2, b2, w3, b3)

    return jnp.transpose(out.reshape(Cout, N, H, W), (1, 0, 2, 3))


def init_params(key, in_channels, out_channels, eps=1e-5):
    k1, k2, k3 = jax.random.split(key, 3)

    def kaiming_oihw(k, cout, cin, kh, kw):
        # kaiming_normal_, mode='fan_out', nonlinearity='relu'
        std = (2.0 / (cout * kh * kw)) ** 0.5
        return jax.random.normal(k, (cout, cin, kh, kw), jnp.float32) * std

    w1_oihw = kaiming_oihw(k1, out_channels, in_channels, 1, 1)
    w2_oihw = kaiming_oihw(k2, out_channels, out_channels, 3, 3)
    w3_oihw = kaiming_oihw(k3, out_channels, out_channels, 1, 1)

    def bn_fold(c):
        gamma = jnp.ones((c,), jnp.float32)
        beta = jnp.zeros((c,), jnp.float32)
        mean = jnp.zeros((c,), jnp.float32)
        var = jnp.ones((c,), jnp.float32)
        scale = gamma / jnp.sqrt(var + eps)
        bias = beta - mean * scale
        return scale, bias

    s1, b1 = bn_fold(out_channels)
    s2, b2 = bn_fold(out_channels)
    s3, b3 = bn_fold(out_channels)

    # Fold BN scale into weights (per output channel), cast to bf16 for MXU.
    w1 = (w1_oihw[:, :, 0, 0] * s1[:, None]).astype(jnp.bfloat16)      # (Co, Ci)
    # conv2: (Co, Ci, 3, 3) -> (Co, 9*Ci) with K ordered (kh, kw, cin)
    w2 = (jnp.transpose(w2_oihw, (0, 2, 3, 1))
          .reshape(out_channels, 9 * out_channels)
          * s2[:, None]).astype(jnp.bfloat16)                          # (Co, 9Ci)
    w3 = (w3_oihw[:, :, 0, 0] * s3[:, None]).astype(jnp.bfloat16)      # (Co, Co)

    return (w1, b1.reshape(-1, 1), w2, b2.reshape(-1, 1), w3, b3.reshape(-1, 1))


def reference_forward(x, kernel_params):
    # Pure-JAX reference mirroring the kernel's bf16 MXU / f32 accumulate math.
    w1, b1, w2, b2, w3, b3 = kernel_params
    C = w1.shape[0]
    w1o = w1[:, :, None, None]                                          # OIHW
    w2o = jnp.transpose(w2.reshape(C, 3, 3, C), (0, 3, 1, 2))           # OIHW
    w3o = w3[:, :, None, None]

    def conv(x, w, pad):
        return jax.lax.conv_general_dilated(
            x.astype(jnp.bfloat16), w, window_strides=(1, 1), padding=pad,
            dimension_numbers=("NCHW", "OIHW", "NCHW"),
            preferred_element_type=jnp.float32)

    y = jax.nn.relu(conv(x, w1o, "VALID") + b1.reshape(1, -1, 1, 1))
    y = jax.nn.relu(conv(y, w2o, ((1, 1), (1, 1))) + b2.reshape(1, -1, 1, 1))
    y = conv(y, w3o, "VALID") + b3.reshape(1, -1, 1, 1)
    return jax.nn.relu(y + x)


if __name__ == "__main__":
    key = jax.random.PRNGKey(0)
    kx, kp = jax.random.split(key)

    # residual add with expansion=1, downsample=None requires in_ch == out_ch
    N, C, H, W = 2, 8, 16, 16
    x = jax.random.normal(kx, (N, C, H, W), jnp.float32)

    kernel_params = init_params(kp, in_channels=C, out_channels=C)

    out = bottleneck_forward(x, kernel_params)
    out = jax.block_until_ready(out)

    ref = reference_forward(x, kernel_params)
    assert out.shape == (N, C, H, W)
    max_err = float(jnp.max(jnp.abs(out - ref)))
    assert jnp.allclose(out, ref, atol=2e-3, rtol=2e-3), max_err

    print("KERNEL_OK")
</pallas_src>

<mosaic_0001>
module attributes {stable_mosaic.version = 11 : i64} {
  func.func @bottleneck_kernel(%arg0: i32, %arg1: memref<8x512xf32, #tpu.memory_space<vmem>>, %arg2: memref<72x512xbf16, #tpu.memory_space<vmem>>, %arg3: memref<8x8xbf16, #tpu.memory_space<vmem>>, %arg4: memref<8x1xf32, #tpu.memory_space<vmem>>, %arg5: memref<8x72xbf16, #tpu.memory_space<vmem>>, %arg6: memref<8x1xf32, #tpu.memory_space<vmem>>, %arg7: memref<8x8xbf16, #tpu.memory_space<vmem>>, %arg8: memref<8x1xf32, #tpu.memory_space<vmem>>, %arg9: memref<8x512xf32, #tpu.memory_space<vmem>>) attributes {dimension_semantics = [#tpu.dimension_semantics<arbitrary>], iteration_bounds = array<i64: 1>, scalar_prefetch = 0 : i64, scratch_operands = 0 : i64, tpu.core_type = #tpu.core_type<tc>, window_params = [{pipeline_mode = #tpu.pipeline_mode<synchronous>, transform_indices = @transform_0, window_bounds = array<i64: 8, 512>}, {pipeline_mode = #tpu.pipeline_mode<synchronous>, transform_indices = @transform_1, window_bounds = array<i64: 72, 512>}, {pipeline_mode = #tpu.pipeline_mode<synchronous>, transform_indices = @transform_2, window_bounds = array<i64: 8, 8>}, {pipeline_mode = #tpu.pipeline_mode<synchronous>, transform_indices = @transform_3, window_bounds = array<i64: 8, 1>}, {pipeline_mode = #tpu.pipeline_mode<synchronous>, transform_indices = @transform_4, window_bounds = array<i64: 8, 72>}, {pipeline_mode = #tpu.pipeline_mode<synchronous>, transform_indices = @transform_5, window_bounds = array<i64: 8, 1>}, {pipeline_mode = #tpu.pipeline_mode<synchronous>, transform_indices = @transform_6, window_bounds = array<i64: 8, 8>}, {pipeline_mode = #tpu.pipeline_mode<synchronous>, transform_indices = @transform_7, window_bounds = array<i64: 8, 1>}, {pipeline_mode = #tpu.pipeline_mode<synchronous>, transform_indices = @transform_8, window_bounds = array<i64: 8, 512>}]} {
    %c0 = arith.constant 0 : index
    %c0_0 = arith.constant 0 : index
    %0 = vector.load %arg1[%c0, %c0_0] : memref<8x512xf32, #tpu.memory_space<vmem>>, vector<8x512xf32>
    %c0_1 = arith.constant 0 : index
    %c0_2 = arith.constant 0 : index
    %1 = vector.load %arg3[%c0_1, %c0_2] : memref<8x8xbf16, #tpu.memory_space<vmem>>, vector<8x8xbf16>
    %2 = arith.truncf %0 : vector<8x512xf32> to vector<8x512xbf16>
    %cst = arith.constant dense<0.000000e+00> : vector<8x512xf32>
    %3 = tpu.matmul %1, %2, %cst {dimension_numbers = #tpu.dot_dimension_numbers<[1], [0], [0], [1], [0, 0, 1, 1], [], []>} : vector<8x8xbf16>, vector<8x512xbf16>, vector<8x512xf32> -> vector<8x512xf32>
    %c0_3 = arith.constant 0 : index
    %c0_4 = arith.constant 0 : index
    %4 = vector.load %arg4[%c0_3, %c0_4] : memref<8x1xf32, #tpu.memory_space<vmem>>, vector<8x1xf32>
    %5 = vector.broadcast %4 : vector<8x1xf32> to vector<8x512xf32>
    %6 = arith.addf %3, %5 : vector<8x512xf32>
    %cst_5 = arith.constant 0.000000e+00 : f32
    %7 = vector.broadcast %cst_5 : f32 to vector<8x512xf32>
    %8 = arith.maximumf %6, %7 : vector<8x512xf32>
    %cst_6 = arith.constant 0.000000e+00 : f32
    %9 = vector.broadcast %cst_6 : f32 to vector<8x17xf32>
    %10 = vector.extract_strided_slice %8 {offsets = [0, 0], sizes = [8, 495], strides = [1, 1]} : vector<8x512xf32> to vector<8x495xf32>
    %11 = tpu.concatenate %9, %10 in 1 : vector<8x17xf32>, vector<8x495xf32> -> vector<8x512xf32>
    %cst_7 = arith.constant 0.000000e+00 : f32
    %12 = vector.broadcast %cst_7 : f32 to vector<8x16xf32>
    %13 = vector.extract_strided_slice %8 {offsets = [0, 0], sizes = [8, 496], strides = [1, 1]} : vector<8x512xf32> to vector<8x496xf32>
    %14 = tpu.concatenate %12, %13 in 1 : vector<8x16xf32>, vector<8x496xf32> -> vector<8x512xf32>
    %cst_8 = arith.constant 0.000000e+00 : f32
    %15 = vector.broadcast %cst_8 : f32 to vector<8x15xf32>
    %16 = vector.extract_strided_slice %8 {offsets = [0, 0], sizes = [8, 497], strides = [1, 1]} : vector<8x512xf32> to vector<8x497xf32>
    %17 = tpu.concatenate %15, %16 in 1 : vector<8x15xf32>, vector<8x497xf32> -> vector<8x512xf32>
    %cst_9 = arith.constant 0.000000e+00 : f32
    %18 = vector.broadcast %cst_9 : f32 to vector<8x1xf32>
    %19 = vector.extract_strided_slice %8 {offsets = [0, 0], sizes = [8, 511], strides = [1, 1]} : vector<8x512xf32> to vector<8x511xf32>
    %20 = tpu.concatenate %18, %19 in 1 : vector<8x1xf32>, vector<8x511xf32> -> vector<8x512xf32>
    %21 = vector.extract_strided_slice %8 {offsets = [0, 1], sizes = [8, 511], strides = [1, 1]} : vector<8x512xf32> to vector<8x511xf32>
    %cst_10 = arith.constant 0.000000e+00 : f32
    %22 = vector.broadcast %cst_10 : f32 to vector<8x1xf32>
    %23 = tpu.concatenate %21, %22 in 1 : vector<8x511xf32>, vector<8x1xf32> -> vector<8x512xf32>
    %24 = vector.extract_strided_slice %8 {offsets = [0, 15], sizes = [8, 497], strides = [1, 1]} : vector<8x512xf32> to vector<8x497xf32>
    %cst_11 = arith.constant 0.000000e+00 : f32
    %25 = vector.broadcast %cst_11 : f32 to vector<8x15xf32>
    %26 = tpu.concatenate %24, %25 in 1 : vector<8x497xf32>, vector<8x15xf32> -> vector<8x512xf32>
    %27 = vector.extract_strided_slice %8 {offsets = [0, 16], sizes = [8, 496], strides = [1, 1]} : vector<8x512xf32> to vector<8x496xf32>
    %cst_12 = arith.constant 0.000000e+00 : f32
    %28 = vector.broadcast %cst_12 : f32 to vector<8x16xf32>
    %29 = tpu.concatenate %27, %28 in 1 : vector<8x496xf32>, vector<8x16xf32> -> vector<8x512xf32>
    %30 = vector.extract_strided_slice %8 {offsets = [0, 17], sizes = [8, 495], strides = [1, 1]} : vector<8x512xf32> to vector<8x495xf32>
    %cst_13 = arith.constant 0.000000e+00 : f32
    %31 = vector.broadcast %cst_13 : f32 to vector<8x17xf32>
    %32 = tpu.concatenate %30, %31 in 1 : vector<8x495xf32>, vector<8x17xf32> -> vector<8x512xf32>
    %33 = tpu.concatenate %11, %14, %17, %20, %8, %23, %26, %29, %32 in 0 : vector<8x512xf32>, vector<8x512xf32>, vector<8x512xf32>, vector<8x512xf32>, vector<8x512xf32>, vector<8x512xf32>, vector<8x512xf32>, vector<8x512xf32>, vector<8x512xf32> -> vector<72x512xf32>
    %34 = arith.truncf %33 : vector<72x512xf32> to vector<72x512xbf16>
    %c0_14 = arith.constant 0 : index
    %c0_15 = arith.constant 0 : index
    %35 = vector.load %arg2[%c0_14, %c0_15] : memref<72x512xbf16, #tpu.memory_space<vmem>>, vector<72x512xbf16>
    %36 = arith.mulf %34, %35 : vector<72x512xbf16>
    %c0_16 = arith.constant 0 : index
    %c0_17 = arith.constant 0 : index
    %37 = vector.load %arg5[%c0_16, %c0_17] : memref<8x72xbf16, #tpu.memory_space<vmem>>, vector<8x72xbf16>
    %cst_18 = arith.constant dense<0.000000e+00> : vector<8x512xf32>
    %38 = tpu.matmul %37, %36, %cst_18 {dimension_numbers = #tpu.dot_dimension_numbers<[1], [0], [0], [1], [0, 0, 1, 1], [], []>} : vector<8x72xbf16>, vector<72x512xbf16>, vector<8x512xf32> -> vector<8x512xf32>
    %c0_19 = arith.constant 0 : index
    %c0_20 = arith.constant 0 : index
    %39 = vector.load %arg6[%c0_19, %c0_20] : memref<8x1xf32, #tpu.memory_space<vmem>>, vector<8x1xf32>
    %40 = vector.broadcast %39 : vector<8x1xf32> to vector<8x512xf32>
    %41 = arith.addf %38, %40 : vector<8x512xf32>
    %cst_21 = arith.constant 0.000000e+00 : f32
    %42 = vector.broadcast %cst_21 : f32 to vector<8x512xf32>
    %43 = arith.maximumf %41, %42 : vector<8x512xf32>
    %c0_22 = arith.constant 0 : index
    %c0_23 = arith.constant 0 : index
    %44 = vector.load %arg7[%c0_22, %c0_23] : memref<8x8xbf16, #tpu.memory_space<vmem>>, vector<8x8xbf16>
    %45 = arith.truncf %43 : vector<8x512xf32> to vector<8x512xbf16>
    %cst_24 = arith.constant dense<0.000000e+00> : vector<8x512xf32>
    %46 = tpu.matmul %44, %45, %cst_24 {dimension_numbers = #tpu.dot_dimension_numbers<[1], [0], [0], [1], [0, 0, 1, 1], [], []>} : vector<8x8xbf16>, vector<8x512xbf16>, vector<8x512xf32> -> vector<8x512xf32>
    %c0_25 = arith.constant 0 : index
    %c0_26 = arith.constant 0 : index
    %47 = vector.load %arg8[%c0_25, %c0_26] : memref<8x1xf32, #tpu.memory_space<vmem>>, vector<8x1xf32>
    %48 = vector.broadcast %47 : vector<8x1xf32> to vector<8x512xf32>
    %49 = arith.addf %46, %48 : vector<8x512xf32>
    %50 = arith.addf %49, %0 : vector<8x512xf32>
    %cst_27 = arith.constant 0.000000e+00 : f32
    %51 = vector.broadcast %cst_27 : f32 to vector<8x512xf32>
    %52 = arith.maximumf %50, %51 : vector<8x512xf32>
    %c0_28 = arith.constant 0 : index
    %c0_29 = arith.constant 0 : index
    %53 = vector.load %arg9[%c0_28, %c0_29] : memref<8x512xf32, #tpu.memory_space<vmem>>, vector<8x512xf32>
    tpu.vector_store %arg9[%c0_28, %c0_29], %52 {strides = array<i32>} : memref<8x512xf32, #tpu.memory_space<vmem>>, vector<8x512xf32>,
    return
  }
  func.func @transform_0(%arg0: i32) -> (i32, i32) {
    %c0_i32 = arith.constant 0 : i32
    %c0_i32_0 = arith.constant 0 : i32
    %c0_i32_1 = arith.constant 0 : i32
    return %c0_i32, %c0_i32_0 : i32, i32
  }
  func.func @transform_1(%arg0: i32) -> (i32, i32) {
    %c0_i32 = arith.constant 0 : i32
    %c0_i32_0 = arith.constant 0 : i32
    %c0_i32_1 = arith.constant 0 : i32
    return %c0_i32, %c0_i32_0 : i32, i32
  }
  func.func @transform_2(%arg0: i32) -> (i32, i32) {
    %c0_i32 = arith.constant 0 : i32
    %c0_i32_0 = arith.constant 0 : i32
    %c0_i32_1 = arith.constant 0 : i32
    return %c0_i32, %c0_i32_0 : i32, i32
  }
  func.func @transform_3(%arg0: i32) -> (i32, i32) {
    %c0_i32 = arith.constant 0 : i32
    %c0_i32_0 = arith.constant 0 : i32
    %c0_i32_1 = arith.constant 0 : i32
    return %c0_i32, %c0_i32_0 : i32, i32
  }
  func.func @transform_4(%arg0: i32) -> (i32, i32) {
    %c0_i32 = arith.constant 0 : i32
    %c0_i32_0 = arith.constant 0 : i32
    %c0_i32_1 = arith.constant 0 : i32
    return %c0_i32, %c0_i32_0 : i32, i32
  }
  func.func @transform_5(%arg0: i32) -> (i32, i32) {
    %c0_i32 = arith.constant 0 : i32
    %c0_i32_0 = arith.constant 0 : i32
    %c0_i32_1 = arith.constant 0 : i32
    return %c0_i32, %c0_i32_0 : i32, i32
  }
  func.func @transform_6(%arg0: i32) -> (i32, i32) {
    %c0_i32 = arith.constant 0 : i32
    %c0_i32_0 = arith.constant 0 : i32
    %c0_i32_1 = arith.constant 0 : i32
    return %c0_i32, %c0_i32_0 : i32, i32
  }
  func.func @transform_7(%arg0: i32) -> (i32, i32) {
    %c0_i32 = arith.constant 0 : i32
    %c0_i32_0 = arith.constant 0 : i32
    %c0_i32_1 = arith.constant 0 : i32
    return %c0_i32, %c0_i32_0 : i32, i32
  }
  func.func @transform_8(%arg0: i32) -> (i32, i32) {
    %c0_i32 = arith.constant 0 : i32
    %c0_i32_0 = arith.constant 0 : i32
    %c0_i32_1 = arith.constant 0 : i32
    return %c0_i32, %c0_i32_0 : i32, i32
  }
}

</mosaic_0001>

<bundles_post_ra>
// kernel: tpu_custom_call.1
= control target key start
LH: loop header
LB: loop body
LE: loop exit
PB: predicated region body
PF: predicated region fallthrough
CT: control target
= control target key end

     0   :  { %13 = vsyncpa [#allocation3], 0  ;;  %s1113_s0 = inlined_call_operand.hbm [shape: f32[8,512], index: 0, kind: input, shape index: {}]   ;;  %s1114_s1 = inlined_call_operand.hbm [shape: bf16[72,512], index: 1, kind: input, shape index: {}]   ;;  %s1115_s2 = inlined_call_operand.vmem [shape: bf16[8,8], index: 2, kind: input, shape index: {}]   ;;  %s1116_s3 = inlined_call_operand.vmem [shape: f32[8,1], index: 3, kind: input, shape index: {}]   ;;  %s1117_s4 = inlined_call_operand.vmem [shape: bf16[8,72], index: 4, kind: input, shape index: {}]   ;;  %s1118_s5 = inlined_call_operand.vmem [shape: f32[8,1], index: 5, kind: input, shape index: {}]   ;;  %s1119_s6 = inlined_call_operand.vmem [shape: bf16[8,8], index: 6, kind: input, shape index: {}]   ;;  %s1120_s7 = inlined_call_operand.vmem [shape: f32[8,1], index: 7, kind: input, shape index: {}]   ;;  %s1121_s8 = inlined_call_operand.hbm [shape: f32[8,512], index: 8, kind: output, shape index: {}]  }
   0x1   :  { %14 = vsyncpa [#allocation6], 0 }
   0x2   :  { %15 = vsyncpa [#allocation4], 0  ;;  %s933_s27 = smov [#allocation2]   ;;  %s934_s29 = smov [#allocation5]  }
   0x3   :  { %s22_s28 = sshll.u32 %s933_s27, 4  ;;  %s31_s30 = sshll.u32 %s934_s29, 4  ;;  %s23_s28 = int_to_ptr.vmem [resolvable:$true] %s22_s28  ;;  %s32_s30 = int_to_ptr.vmem [resolvable:$true] %s31_s30 }
   0x4   :  { %s875_s9 = scalar_lea.vmem %s23_s28, 512  ;;  %p880_p1 = scmp.lt.s32.totalorder %s23_s28, %s23_s28 }
   0x5   :  { %p876_p0 = scmp.ne.s32.totalorder %s23_s28, %s875_s9  ;;  %p881_p2 = scmp.lt.s32.totalorder %s875_s9, %s875_s9 }
   0x7   :  { %p882_p3 = por %p881_p2, %p880_p1 }
   0x9   :  { %p883_p4 = pnand %p882_p3, %p876_p0 }
   0xb   :  { %886 = shalt.err (!%p883_p4)
}
   0xc   :  { %25 = dma.hbm_to_vmem [thread:$0]  %s1113_s0, 512, %s23_s28, [#allocation3]  }
   0xd   :  { %s895_s12 = scalar_lea.vmem %s32_s30, 2304  ;;  %p900_p6 = scmp.lt.s32.totalorder %s32_s30, %s32_s30 }
   0xe   :  { %p896_p5 = scmp.ne.s32.totalorder %s32_s30, %s895_s12  ;;  %p901_p7 = scmp.lt.s32.totalorder %s895_s12, %s895_s12 }
  0x10   :  { %p902_p8 = por %p901_p7, %p900_p6 }
  0x12   :  { %p903_p9 = pnand %p902_p8, %p896_p5 }
  0x14   :  { %906 = shalt.err (!%p903_p9)
}
  0x15   :  { %s935_s13 = smov 256   ;;  %s936_s14 = smov 16  }
  0x16   :  { %37 = dma.hbm_to_vmem [thread:$0]  %s1114_s1, 2304, %s32_s30, [#allocation6], %s935_s13, %s935_s13, %s936_s14  }
  0x17   :  { %927 = dma.done.wait [#allocation3], 512  }
  0x18   :  { %928 = vsyncadd [#allocation3], 4294966784 }
  0x19   :  { %929 = dma.done.wait [#allocation6], 2304  }
  0x1a   :  { %930 = vsyncadd [#allocation6], 4294964992  ;;  %v937_v0 = vmov 0   ;;  %v1002_v1 = vld [vmem:[#allocation2 + $0x8] sm:$0xff]  ;;  %vm76_vm0 = vcmask 1043456   ;;  %v1004_v2 = vld [vmem:[#allocation2 + $0x18] sm:$0xff] }
  0x1b   :  { %121 = vmatprep.mubr.bf16.mxu0 %v937_v0  ;;  %162 = vmatprep.mubr.bf16.mxu1 %v937_v0  ;;  %v1006_v3 = vld [vmem:[#allocation2] sm:$0xff]  ;;  %v63_v4 = vpack.c.bf16 %v1002_v1, %v1002_v1  ;;  %v65_v5 = vpack.c.bf16 %v1004_v2, %v1004_v2  ;;  %v1014_v7 = vld [vmem:[#allocation2 + $0x10] sm:$0xff]  ;;  %vm72_vm1 = vcmask 64512   ;;  %s940_s19 = smov 112   ;;  %s941_s20 = smov 127   ;;  %vm306_vm2 = vcmask 908288  }
  0x1c   :  { %757 = vset.pattern.permute.xlu0 %v937_v0  ;;  %838 = vset.pattern.permute.xlu1 %v937_v0  ;;  %v62_v6 = vpack.c.bf16 %v1006_v3, %v1006_v3  ;;  %v66_v8 = vld [vmem:[%s1116_s3] sm:$0xff]  ;;  %v64_v9 = vpack.c.bf16 %v1014_v7, %v1014_v7  ;;  %s939_s3 = smov 113   ;;  %s942_s21 = smov 15   ;;  %v352_v37 = vld [vmem:[#allocation5 + $0x88] sm:$0xff]  ;;  %vm272_vm3 = vcmask 924672   ;;  %vm289_vm4 = vcmask 916480  }
  0x1d   :  { %v61_v10 = vld [vmem:[%s1115_s2] sm:$0xf]  ;;  %69 = vperm.xlu0 %757, %v66_v8   ;;  %712 = vmatprep.subr.msk.bf16.mxu0 %vm76_vm0, %v63_v4  ;;  %s938_s2 = smov 111   ;;  %s943_s22 = smov 1   ;;  %v735_v45 = vcombine.high %v352_v37, %v352_v37  ;;  %v734_v48 = vcombine.low %v352_v37, %v352_v37  ;;  %vm255_vm5 = vcmask 1039360   ;;  %vm221_vm6 = vcmask 121856  }
  0x1e   :  { %714 = vmatprep.subr.msk.bf16.mxu1 %vm76_vm0, %v65_v5  ;;  %v78_v11 = vsel %vm76_vm0, %v62_v6, 0  ;;  %v84_v12 = vsel %vm76_vm0, %v64_v9, 0  ;;  %s944_s23 = smov 17   ;;  %v581_v34 = vld [vmem:[%s1120_s7] sm:$0xff]  ;;  %vm238_vm7 = vcmask 7168   ;;  %vm187_vm8 = vcmask 138240  }
  0x1f   :  { %104 = vmatpush1.bf16.msra.mxu0 %v78_v11  ;;  %145 = vmatpush1.bf16.msra.mxu1 %v84_v12  ;;  %v468_v35 = vld [vmem:[%s1118_s5] sm:$0xff]  ;;  %vm204_vm9 = vcmask 130048   ;;  %vm474_vm10 = vcmask 588800  }
  0x20   :  { %v351_v36 = vld [vmem:[#allocation5 + $0x80] sm:$0xff] }
  0x21   :  { %v732_v44 = vcombine.low %v351_v36, %v351_v36  ;;  %v733_v47 = vcombine.high %v351_v36, %v351_v36  ;;  %v843_v36 = vld [vmem:[#allocation5 + $0x60] ss:$16 sps:$4 sm:$0xff]  }
  0x22   :  { %713 = vmatmul.mubr.msk.bf16.vlgmr.msra.gmra.mxu0 %vm72_vm1, %v61_v10  ;;  %715 = vmatmul.mubr.msk.bf16.vlgmr.msra.gmra.mxu1 %vm72_vm1, %v61_v10 }
  0x23   :  { %522 = vmatprep.mubr.bf16.mxu0 %v937_v0  ;;  %563 = vmatprep.mubr.bf16.mxu1 %v937_v0 }
  0x98   :  { %v70_v13 = vpop.permute.xlu0 %69 }
  0xe2   :  { %v123_v14 = vpop.f32.mrf.mxu0  ;;  %v164_v16 = vpop.f32.mrf.mxu1 }
  0xe3   :  { %v124_v15 = vadd.f32 %v123_v14, %v70_v13  ;;  %v165_v17 = vadd.f32 %v164_v16, %v70_v13  ;;  %v848_v16 = vld [vmem:[#allocation5 + $0x6c] ss:$16 sps:$4 sm:$0xff]  }
  0xe4   :  { %v125_v18 = vpop.f32.mrf.mxu0  ;;  %v166_v20 = vpop.f32.mrf.mxu1 }
  0xe5   :  { %v126_v19 = vadd.f32 %v125_v18, %v70_v13  ;;  %v167_v21 = vadd.f32 %v166_v20, %v70_v13  ;;  %v1032_v23 = vmax.f32 %v124_v15, 0.0  ;;  %v1036_v26 = vmax.f32 %v165_v17, 0.0 }
  0xe6   :  { %v127_v22 = vpop.f32.mrf.mxu0  ;;  %v168_v25 = vpop.f32.mrf.mxu1 }
  0xe7   :  { %v1034_v24 = vmax.f32 %v126_v19, 0.0  ;;  %v1038_v27 = vmax.f32 %v167_v21, 0.0  ;;  %v846_v21 = vld [vmem:[#allocation5 + $0x68] ss:$16 sps:$4 sm:$0xff]  }
  0xe8   :  { %v128_v28 = vpop.f32.mrf.mxu0  ;;  %v169_v29 = vpop.f32.mrf.mxu1 }
  0xe9   :  { %v758_v30 = vpack.i.bf16 %v1034_v24, %v1032_v23  ;;  %v763_v31 = vpack.i.bf16 %v1038_v27, %v1036_v26  ;;  %v773_v32 = vpack.i.bf16 %v1032_v23, %v1038_v27  ;;  %v768_v33 = vpack.i.bf16 %v1036_v26, %v1034_v24 }
  0xeb   :  { %759 = vrot.lane.b32.xlu0 %v758_v30, %s938_s2  ;;  %764 = vrot.lane.b32.xlu1 %v763_v31, %s938_s2 }
  0xef   :  { %774 = vrot.lane.b32.xlu0 %v773_v32, %s939_s3  ;;  %769 = vrot.lane.b32.xlu1 %v768_v33, %s939_s3 }
  0xf3   :  { %784 = vrot.lane.b32.xlu0 %v773_v32, %s940_s19  ;;  %779 = vrot.lane.b32.xlu1 %v768_v33, %s940_s19 }
  0xf7   :  { %794 = vrot.lane.b32.xlu0 %v773_v32, %s941_s20  ;;  %789 = vrot.lane.b32.xlu1 %v768_v33, %s941_s20 }
  0xfb   :  { %804 = vrot.lane.b32.xlu0 %v763_v31, %s942_s21  ;;  %799 = vrot.lane.b32.xlu1 %v758_v30, %s942_s21 }
  0xff   :  { %814 = vrot.lane.b32.xlu0 %v763_v31, %s943_s22  ;;  %809 = vrot.lane.b32.xlu1 %v758_v30, %s943_s22 }
 0x103   :  { %824 = vrot.lane.b32.xlu0 %v763_v31, %s944_s23  ;;  %819 = vrot.lane.b32.xlu1 %v758_v30, %s944_s23 }
 0x107   :  { %834 = vrot.lane.b32.xlu0 %v763_v31, %s936_s14  ;;  %829 = vrot.lane.b32.xlu1 %v758_v30, %s936_s14 }
 0x10b   :  { %584 = vperm.xlu0 %757, %v581_v34   ;;  %471 = vperm.xlu1 %838, %v468_v35  }
 0x15d   :  { %v760_v38 = vpop.permute.xlu0 %759  ;;  %v765_v39 = vpop.permute.xlu1 %764 }
 0x15e   :  { %v762_v40 = vunpack.i.h.bf16 %v760_v38  ;;  %v761_v41 = vunpack.i.l.bf16 %v760_v38  ;;  %v767_v42 = vunpack.i.h.bf16 %v765_v39  ;;  %v766_v43 = vunpack.i.l.bf16 %v765_v39 }
 0x160   :  { %v307_v46 = vsel %vm306_vm2, %v761_v41, %v762_v40  ;;  %v314_v49 = vsel %vm306_vm2, %v767_v42, 0.0  ;;  %v309_v50 = vsel %vm306_vm2, %v766_v43, %v767_v42  ;;  %v308_v51 = vsel %vm306_vm2, %v762_v40, %v766_v43  ;;  %v845_v40 = vld [vmem:[#allocation5 + $0x64] ss:$16 sps:$4 sm:$0xff]  }
 0x161   :  { %v331_v52 = vpack.c.bf16 %v307_v46, %v307_v46  ;;  %v775_v53 = vpop.permute.xlu0 %774  ;;  %v334_v54 = vpack.c.bf16 %v314_v49, %v314_v49  ;;  %v333_v55 = vpack.c.bf16 %v309_v50, %v309_v50  ;;  %v332_v56 = vpack.c.bf16 %v308_v51, %v308_v51  ;;  %v770_v57 = vpop.permute.xlu1 %769  ;;  %v853_v51 = vld [vmem:[#allocation5 + $0x44] ss:$16 sps:$4 sm:$0xff]  }
 0x162   :  { %v772_v58 = vunpack.i.h.bf16 %v770_v57  ;;  %v771_v59 = vunpack.i.l.bf16 %v770_v57  ;;  %v777_v60 = vunpack.i.h.bf16 %v775_v53  ;;  %v776_v63 = vunpack.i.l.bf16 %v775_v53 }
 0x163   :  { %v463_v61 = vmul.bf16 %v732_v44, %v331_v52  ;;  %v466_v62 = vmul.bf16 %v735_v45, %v334_v54  ;;  %v464_v4 = vmul.bf16 %v733_v47, %v332_v56  ;;  %v465_v5 = vmul.bf16 %v734_v48, %v333_v55  ;;  %v854_v44 = vld [vmem:[#allocation5 + $0x48] ss:$16 sps:$4 sm:$0xff]   ;;  %v856_v45 = vld [vmem:[#allocation5 + $0x4c] ss:$16 sps:$4 sm:$0xff]   ;;  %v851_v56 = vld [vmem:[#allocation5 + $0x40] ss:$16 sps:$4 sm:$0xff]  }
 0x164   :  { %v274_v13 = vsel %vm272_vm3, %v771_v59, %v772_v58  ;;  %v273_v17 = vsel %vm272_vm3, %v777_v60, %v771_v59  ;;  %v275_v18 = vsel %vm272_vm3, %v772_v58, %v776_v63  ;;  %v280_v19 = vsel %vm272_vm3, %v776_v63, 0.0 }
 0x165   :  { %v785_v6 = vpop.permute.xlu0 %784  ;;  %738 = vmatprep.subr.msk.bf16.mxu1 %vm76_vm0, %v466_v62  ;;  %v780_v8 = vpop.permute.xlu1 %779  ;;  %736 = vmatprep.subr.msk.bf16.mxu0 %vm76_vm0, %v464_v4  ;;  %v479_v11 = vsel %vm76_vm0, %v463_v61, 0  ;;  %v485_v12 = vsel %vm76_vm0, %v465_v5, 0 }
 0x166   :  { %v787_v9 = vunpack.i.h.bf16 %v785_v6  ;;  %v786_v10 = vunpack.i.l.bf16 %v785_v6  ;;  %v782_v14 = vunpack.i.h.bf16 %v780_v8  ;;  %v781_v15 = vunpack.i.l.bf16 %v780_v8  ;;  %497 = vmatpush1.bf16.msra.mxu0 %v479_v11  ;;  %538 = vmatpush1.bf16.msra.mxu1 %v485_v12 }
 0x168   :  { %v297_v20 = vsel %vm289_vm4, %v786_v10, 0.0  ;;  %v291_v22 = vsel %vm289_vm4, %v781_v15, %v782_v14  ;;  %v290_v25 = vsel %vm289_vm4, %v787_v9, %v781_v15  ;;  %v292_v28 = vsel %vm289_vm4, %v782_v14, %v786_v10  ;;  %v849_v14 = vld [vmem:[#allocation5 + $0x20] ss:$16 sps:$4 sm:$0xff]  }
 0x169   :  { %v330_v29 = vpack.c.bf16 %v297_v20, %v280_v19  ;;  %v795_v30 = vpop.permute.xlu0 %794  ;;  %v327_v31 = vpack.c.bf16 %v290_v25, %v273_v17  ;;  %v329_v32 = vpack.c.bf16 %v292_v28, %v275_v18  ;;  %v790_v33 = vpop.permute.xlu1 %789  ;;  %v328_v39 = vpack.c.bf16 %v291_v22, %v274_v13 }
 0x16a   :  { %v797_v34 = vunpack.i.h.bf16 %v795_v30  ;;  %v796_v35 = vunpack.i.l.bf16 %v795_v30  ;;  %v792_v37 = vunpack.i.h.bf16 %v790_v33  ;;  %v791_v38 = vunpack.i.l.bf16 %v790_v33 }
 0x16b   :  { %v462_v41 = vmul.bf16 %v848_v16, %v330_v29  ;;  %v461_v43 = vmul.bf16 %v846_v21, %v329_v32  ;;  %v459_v55 = vmul.bf16 %v843_v36, %v327_v31  ;;  %v460_v59 = vmul.bf16 %v845_v40, %v328_v39  ;;  %v860_v16 = vld [vmem:[#allocation5 + $0x28] ss:$16 sps:$4 sm:$0xff]   ;;  %v859_v21 = vld [vmem:[#allocation5 + $0x24] ss:$16 sps:$4 sm:$0xff]  }
 0x16c   :  { %v263_v42 = vsel %vm255_vm5, %v796_v35, 0.0  ;;  %v257_v46 = vsel %vm255_vm5, %v791_v38, %v792_v37  ;;  %v256_v47 = vsel %vm255_vm5, %v797_v34, %v791_v38  ;;  %v258_v48 = vsel %vm255_vm5, %v792_v37, %v796_v35 }
 0x16d   :  { %v326_v49 = vpack.c.bf16 %v263_v42, %v1038_v27  ;;  %v805_v50 = vpop.permute.xlu0 %804  ;;  %539 = vmatprep.subr.bf16.mxu1 %v462_v41  ;;  %v323_v52 = vpack.c.bf16 %v256_v47, %v1032_v23  ;;  %v325_v53 = vpack.c.bf16 %v258_v48, %v1036_v26  ;;  %v800_v54 = vpop.permute.xlu1 %799  ;;  %v324_v60 = vpack.c.bf16 %v257_v46, %v1034_v24  ;;  %v862_v24 = vld [vmem:[#allocation5 + $0x2c] ss:$16 sps:$4 sm:$0xff]  }
 0x16e   :  { %540 = vmatpush1.bf16.msra.mxu1 %v461_v43  ;;  %v807_v57 = vunpack.i.h.bf16 %v805_v50  ;;  %v806_v58 = vunpack.i.l.bf16 %v805_v50  ;;  %v802_v61 = vunpack.i.h.bf16 %v800_v54  ;;  %v801_v62 = vunpack.i.l.bf16 %v800_v54  ;;  %498 = vmatprep.subr.bf16.mxu0 %v460_v59  ;;  %v866_v48 = vld [vmem:[#allocation5 + $0xc] ss:$16 sps:$4 sm:$0xff]   ;;  %v864_v54 = vld [vmem:[#allocation5 + $0x8] ss:$16 sps:$4 sm:$0xff]  }
 0x16f   :  { %v458_v63 = vmul.bf16 %v856_v45, %v326_v49  ;;  %v457_v27 = vmul.bf16 %v854_v44, %v325_v53  ;;  %v456_v23 = vmul.bf16 %v853_v51, %v324_v60  ;;  %499 = vmatpush1.bf16.msra.mxu0 %v459_v55  ;;  %v455_v8 = vmul.bf16 %v851_v56, %v323_v52  ;;  %v857_v45 = vld [vmem:[#allocation5] ss:$16 sps:$4 sm:$0xff]   ;;  %v863_v53 = vld [vmem:[#allocation5 + $0x4] ss:$16 sps:$4 sm:$0xff]  }
 0x170   :  { %v229_v11 = vsel %vm221_vm6, 0.0, %v801_v62  ;;  %v223_v12 = vsel %vm221_vm6, %v802_v61, %v806_v58  ;;  %v224_v13 = vsel %vm221_vm6, %v806_v58, %v807_v57  ;;  %v222_v25 = vsel %vm221_vm6, %v801_v62, %v802_v61 }
 0x171   :  { %v815_v4 = vpop.permute.xlu0 %814  ;;  %v810_v26 = vpop.permute.xlu1 %809  ;;  %541 = vmatprep.subr.bf16.mxu1 %v458_v63  ;;  %500 = vmatprep.subr.bf16.mxu0 %v456_v23  ;;  %v467_v23 = vld [vmem:[%s1117_s4] sm:$0xf] }
 0x172   :  { %v817_v5 = vunpack.i.h.bf16 %v815_v4  ;;  %v816_v6 = vunpack.i.l.bf16 %v815_v4  ;;  %v812_v9 = vunpack.i.h.bf16 %v810_v26  ;;  %v811_v10 = vunpack.i.l.bf16 %v810_v26  ;;  %542 = vmatpush1.bf16.msra.mxu1 %v457_v27 }
 0x173   :  { %501 = vmatpush1.bf16.msra.mxu0 %v455_v8 }
 0x174   :  { %v241_v15 = vsel %vm238_vm7, %v816_v6, %v817_v5  ;;  %v239_v17 = vsel %vm238_vm7, %v811_v10, %v812_v9  ;;  %v246_v18 = vsel %vm238_vm7, 0.0, %v811_v10  ;;  %v240_v19 = vsel %vm238_vm7, %v812_v9, %v816_v6 }
 0x175   :  { %v825_v20 = vpop.permute.xlu0 %824  ;;  %v322_v22 = vpack.c.bf16 %v241_v15, %v224_v13  ;;  %v319_v28 = vpack.c.bf16 %v246_v18, %v229_v11  ;;  %v321_v29 = vpack.c.bf16 %v240_v19, %v223_v12  ;;  %v820_v30 = vpop.permute.xlu1 %819  ;;  %v320_v33 = vpack.c.bf16 %v239_v17, %v222_v25 }
 0x176   :  { %v827_v31 = vunpack.i.h.bf16 %v825_v20  ;;  %v826_v32 = vunpack.i.l.bf16 %v825_v20  ;;  %v822_v36 = vunpack.i.h.bf16 %v820_v30  ;;  %v821_v37 = vunpack.i.l.bf16 %v820_v30  ;;  %v576_v30 = vld [vmem:[%s1119_s6] sm:$0xf]  ;;  %s945_s6 = smov [#allocation7]  }
 0x177   :  { %v454_v34 = vmul.bf16 %v862_v24, %v322_v22  ;;  %v451_v35 = vmul.bf16 %v849_v14, %v319_v28  ;;  %v453_v38 = vmul.bf16 %v860_v16, %v321_v29  ;;  %v452_v40 = vmul.bf16 %v859_v21, %v320_v33  ;;  %s702_s29 = sshll.u32 %s945_s6, 4  ;;  %s703_s29 = int_to_ptr.vmem [resolvable:$true] %s702_s29 }
 0x178   :  { %v190_v44 = vsel %vm187_vm8, %v826_v32, %v827_v31  ;;  %v188_v49 = vsel %vm187_vm8, %v821_v37, %v822_v36  ;;  %v195_v50 = vsel %vm187_vm8, 0.0, %v821_v37  ;;  %v189_v51 = vsel %vm187_vm8, %v822_v36, %v826_v32  ;;  %s907_s30 = scalar_lea.vmem %s703_s29, 512  ;;  %p912_p11 = scmp.lt.s32.totalorder %s703_s29, %s703_s29 }
 0x179   :  { %v835_v39 = vpop.permute.xlu0 %834  ;;  %543 = vmatprep.subr.bf16.mxu1 %v454_v34  ;;  %v830_v41 = vpop.permute.xlu1 %829  ;;  %502 = vmatprep.subr.bf16.mxu0 %v452_v40  ;;  %p908_p10 = scmp.ne.s32.totalorder %s703_s29, %s907_s30  ;;  %p913_p12 = scmp.lt.s32.totalorder %s907_s30, %s907_s30 }
 0x17a   :  { %v837_v42 = vunpack.i.h.bf16 %v835_v39  ;;  %v836_v43 = vunpack.i.l.bf16 %v835_v39  ;;  %544 = vmatpush1.bf16.msra.mxu1 %v453_v38  ;;  %v832_v46 = vunpack.i.h.bf16 %v830_v41  ;;  %v831_v47 = vunpack.i.l.bf16 %v830_v41  ;;  %503 = vmatpush1.bf16.msra.mxu0 %v451_v35 }
 0x17b   :  { %p914_p13 = por %p913_p12, %p912_p11 }
 0x17c   :  { %v207_v52 = vsel %vm204_vm9, %v836_v43, %v837_v42  ;;  %v205_v55 = vsel %vm204_vm9, %v831_v47, %v832_v46  ;;  %v212_v56 = vsel %vm204_vm9, 0.0, %v831_v47  ;;  %v206_v57 = vsel %vm204_vm9, %v832_v46, %v836_v43 }
 0x17d   :  { %v318_v58 = vpack.c.bf16 %v207_v52, %v190_v44  ;;  %v315_v59 = vpack.c.bf16 %v212_v56, %v195_v50  ;;  %v317_v60 = vpack.c.bf16 %v206_v57, %v189_v51  ;;  %v316_v61 = vpack.c.bf16 %v205_v55, %v188_v49  ;;  %p915_p0 = pnand %p914_p13, %p908_p10 }
 0x17f   :  { %v450_v62 = vmul.bf16 %v866_v48, %v318_v58  ;;  %v447_v63 = vmul.bf16 %v857_v45, %v315_v59  ;;  %v448_v27 = vmul.bf16 %v863_v53, %v316_v61  ;;  %v449_v4 = vmul.bf16 %v864_v54, %v317_v60 }
 0x181   :  { %545 = vmatprep.subr.bf16.mxu1 %v450_v62  ;;  %504 = vmatprep.subr.bf16.mxu0 %v448_v27 }
 0x182   :  { %546 = vmatpush1.bf16.msra.mxu1 %v449_v4  ;;  %505 = vmatpush1.bf16.msra.mxu0 %v447_v63 }
 0x185   :  { %739 = vmatmul.mubr.msk.bf16.vlgmr.msra.gmra.mxu1 %vm474_vm10, %v467_v23  ;;  %737 = vmatmul.mubr.msk.bf16.vlgmr.msra.gmra.mxu0 %vm474_vm10, %v467_v23 }
 0x186   :  { %675 = vmatprep.mubr.bf16.mxu1 %v937_v0  ;;  %634 = vmatprep.mubr.bf16.mxu0 %v937_v0  ;;  %v472_v26 = vpop.permute.xlu1 %471  ;;  %v585_v31 = vpop.permute.xlu0 %584 }
 0x245   :  { %v565_v5 = vpop.f32.mrf.mxu1  ;;  %v524_v6 = vpop.f32.mrf.mxu0 }
 0x246   :  { %v566_v8 = vadd.f32 %v565_v5, %v472_v26  ;;  %v525_v9 = vadd.f32 %v524_v6, %v472_v26 }
 0x247   :  { %v567_v10 = vpop.f32.mrf.mxu1  ;;  %v526_v11 = vpop.f32.mrf.mxu0 }
 0x248   :  { %v574_v24 = vmax.f32 %v566_v8, 0.0  ;;  %v568_v12 = vadd.f32 %v567_v10, %v472_v26  ;;  %v572_v13 = vmax.f32 %v525_v9, 0.0  ;;  %v527_v14 = vadd.f32 %v526_v11, %v472_v26 }
 0x249   :  { %v569_v15 = vpop.f32.mrf.mxu1  ;;  %v528_v18 = vpop.f32.mrf.mxu0 }
 0x24a   :  { %v579_v16 = vpack.c.bf16 %v574_v24, %v574_v24  ;;  %v575_v17 = vmax.f32 %v568_v12, 0.0  ;;  %v577_v19 = vpack.c.bf16 %v572_v13, %v572_v13  ;;  %v573_v20 = vmax.f32 %v527_v14, 0.0 }
 0x24b   :  { %v570_v21 = vpop.f32.mrf.mxu1  ;;  %v529_v0 = vpop.f32.mrf.mxu0 }
 0x24c   :  { %v580_v22 = vpack.c.bf16 %v575_v17, %v575_v17  ;;  %v578_v25 = vpack.c.bf16 %v573_v20, %v573_v20  ;;  %v597_v28 = vsel %vm76_vm0, %v579_v16, 0  ;;  %v591_v29 = vsel %vm76_vm0, %v577_v19, 0 }
 0x24e   :  { %742 = vmatprep.subr.msk.bf16.mxu1 %vm76_vm0, %v580_v22  ;;  %740 = vmatprep.subr.msk.bf16.mxu0 %vm76_vm0, %v578_v25 }
 0x24f   :  { %658 = vmatpush1.bf16.msra.mxu1 %v597_v28  ;;  %617 = vmatpush1.bf16.msra.mxu0 %v591_v29 }
 0x252   :  { %743 = vmatmul.mubr.msk.bf16.vlgmr.msra.gmra.mxu1 %vm72_vm1, %v576_v30  ;;  %741 = vmatmul.mubr.msk.bf16.vlgmr.msra.gmra.mxu0 %vm72_vm1, %v576_v30 }
 0x312   :  { %v677_v32 = vpop.f32.mrf.mxu1  ;;  %v636_v33 = vpop.f32.mrf.mxu0 }
 0x313   :  { %v678_v34 = vadd.f32 %v677_v32, %v585_v31  ;;  %v637_v35 = vadd.f32 %v636_v33, %v585_v31 }
 0x314   :  { %v679_v36 = vpop.f32.mrf.mxu1  ;;  %v638_v38 = vpop.f32.mrf.mxu0 }
 0x315   :  { %v686_v37 = vadd.f32 %v678_v34, %v1014_v7  ;;  %v680_v39 = vadd.f32 %v679_v36, %v585_v31  ;;  %v684_v40 = vadd.f32 %v637_v35, %v1006_v3  ;;  %v639_v41 = vadd.f32 %v638_v38, %v585_v31 }
 0x316   :  { %v681_v42 = vpop.f32.mrf.mxu1  ;;  %v640_v45 = vpop.f32.mrf.mxu0 }
 0x317   :  { %v690_v43 = vmax.f32 %v686_v37, 0.0  ;;  %v687_v44 = vadd.f32 %v680_v39, %v1004_v2  ;;  %v688_v46 = vmax.f32 %v684_v40, 0.0  ;;  %v685_v47 = vadd.f32 %v639_v41, %v1002_v1 }
 0x318   :  { %v682_v48 = vpop.f32.mrf.mxu1  ;;  %v641_v50 = vpop.f32.mrf.mxu0 }
 0x319   :  { %694 = vst [vmem:[#allocation7 + $0x10] sm:$0xff] %v690_v43  ;;  %v691_v49 = vmax.f32 %v687_v44, 0.0  ;;  %692 = vst [vmem:[#allocation7] sm:$0xff] %v688_v46  ;;  %v689_v7 = vmax.f32 %v685_v47, 0.0 }
 0x31b   :  { %695 = vst [vmem:[#allocation7 + $0x18] sm:$0xff] %v691_v49  ;;  %693 = vst [vmem:[#allocation7 + $0x8] sm:$0xff] %v689_v7 }
 0x31c   :  { %918 = shalt.err (!%p915_p0)
}
 0x31d   :  { %705 = dma.vmem_to_hbm [thread:$0]  %s703_s29, 512, %s1121_s8, [#allocation4]  }
 0x31e   :  { %931 = dma.done.wait [#allocation4], 512  }
 0x31f   :  { %932 = vsyncadd [#allocation4], 4294966784 }
 0x320   :  { %709 = vsyncpa [#allocation3], 1 }
 0x321   :  { %710 = vsyncpa [#allocation6], 1 }
 0x322   :  { %711 = vsyncpa [#allocation4], 1 }

</bundles_post_ra>
